<compile_context>
chip_gen: v7x
topology: tpu7x:2x2x1
jax: 0.10.0
libtpu: 0.0.40
codegen_flags: <defaults>
</compile_context>

<pallas_src>
import functools

import jax
import jax.numpy as jnp
from jax.experimental import pallas as pl
from jax.experimental.pallas import tpu as pltpu


def _round_up(x, m):
    return ((x + m - 1) // m) * m


def _choose_batch_tile(B):
    """Adaptive batch tile.

    * B <= 128: a single full-extent block (allowed even if B is not 8-aligned).
    * B <= 1024: two ~B/2 tiles (even split keeps both v7x TensorCores busy).
    * larger B: ~512-row tiles with an even tile count.
    Per-step VMEM for a 512-row tile is <1 MB, far under VMEM on every
    generation (v5e/v6e 128 MiB, v7x 64 MiB), so only the (8, 128) granule
    constrains the choice.
    """
    if B <= 128:
        return B
    if B <= 1024:
        return _round_up((B + 1) // 2, 8)
    n_tiles = -(-B // 512)
    if n_tiles % 2:
        n_tiles += 1
    return _round_up(-(-B // n_tiles), 8)


def _vae_encoder_kernel(
    x_ref, eps_ref,
    w1_ref, b1_ref, w2_ref, b2_ref, w3_ref, b3_ref,
    wh_ref, bh_ref,            # fused, zero-padded head: [wmu | wlv | 0]
    out_ref,                   # lane-dense packed output [z | mu | log_var | 0]
    *, latent,
):
    cd = w1_ref.dtype          # MXU operand dtype (bf16 default); accumulate f32.
    x = x_ref[...]

    # encode_nn: Linear -> ReLU (x3); f32 accumulation + f32 epilogue.
    h = jnp.maximum(
        jnp.dot(x.astype(cd), w1_ref[...], preferred_element_type=jnp.float32)
        + b1_ref[...], 0.0)
    h = jnp.maximum(
        jnp.dot(h.astype(cd), w2_ref[...], preferred_element_type=jnp.float32)
        + b2_ref[...], 0.0)
    h = jnp.maximum(
        jnp.dot(h.astype(cd), w3_ref[...], preferred_element_type=jnp.float32)
        + b3_ref[...], 0.0)

    # Fused (and pre-padded) mu/log_var head: one MXU pass, zero pad columns
    # cost no extra passes.
    head = (jnp.dot(h.astype(cd), wh_ref[...], preferred_element_type=jnp.float32)
            + bh_ref[...])                       # [mu | log_var | 0]
    mu = head[:, :latent]
    log_var = head[:, latent:2 * latent]

    # reparameterize: z = eps * exp(0.5 * log_var) + mu  (EUP exp, VPU mul/add)
    z = eps_ref[...] * jnp.exp(0.5 * log_var) + mu

    # Single unmasked lane-dense store: [z | mu | log_var | 0], width % 128 == 0.
    out_ref[...] = jnp.concatenate([z, head], axis=-1).astype(out_ref.dtype)


@functools.partial(
    jax.jit, static_argnames=("batch_tile", "compute_dtype", "return_packed"))
def vae_encoder_forward(x, eps, params, *, batch_tile=None,
                        compute_dtype=jnp.bfloat16, return_packed=False):
    """VAEEncoder forward pass as a single Pallas TPU kernel.

    x:   (B, in_dim) float32
    eps: (B, latent) float32 standard-normal noise (torch.randn_like equivalent)
    params: dict of (in, out)-shaped weights and (1, out)-shaped biases.
    compute_dtype: jnp.bfloat16 (default, MXU-native; f32 accumulation) or
                   jnp.float32 (exact path).
    Returns (z, mu, log_var) each (B, latent) f32, or the packed
    (B, round_up(3*latent, 128)) slab [z | mu | log_var | pad] if
    return_packed=True (avoids the wrapper-side column slices).
    """
    B, in_dim = x.shape
    l1 = params["w1"].shape[1]
    l2 = params["w2"].shape[1]
    l3 = params["w3"].shape[1]
    latent = params["wmu"].shape[1]

    if batch_tile is None:
        batch_tile = _choose_batch_tile(B)

    # Lane-dense packed output width: [z | mu | log_var | pad] -> multiple of 128.
    pack_w = _round_up(3 * latent, 128)
    pad_w = pack_w - 3 * latent
    head_w = 2 * latent + pad_w

    # Fused head, zero-padded in the wrapper so the kernel needs no jnp.zeros.
    w_head = jnp.concatenate(
        [params["wmu"], params["wlv"], jnp.zeros((l3, pad_w), jnp.float32)], axis=1)
    b_head = jnp.concatenate(
        [params["bmu"], params["blv"], jnp.zeros((1, pad_w), jnp.float32)], axis=1)

    # MXU operands in compute_dtype; biases stay f32 for the f32 epilogue.
    w1 = params["w1"].astype(compute_dtype)
    w2 = params["w2"].astype(compute_dtype)
    w3 = params["w3"].astype(compute_dtype)
    w_head = w_head.astype(compute_dtype)
    b1, b2, b3 = params["b1"], params["b2"], params["b3"]

    # No wrapper-side pad of x/eps: ragged last block is masked on writeback.
    grid = (pl.cdiv(B, batch_tile),)

    def batch_spec(cols):
        return pl.BlockSpec((batch_tile, cols), lambda i: (i, 0))

    def full_spec(shape):
        # Whole-array block, same block index for every grid step.
        return pl.BlockSpec(shape, lambda i: (0, 0))

    in_specs = [
        batch_spec(in_dim),                                   # x
        batch_spec(latent),                                   # eps
        full_spec((in_dim, l1)), full_spec((1, l1)),          # w1, b1
        full_spec((l1, l2)), full_spec((1, l2)),              # w2, b2
        full_spec((l2, l3)), full_spec((1, l3)),              # w3, b3
        full_spec((l3, head_w)), full_spec((1, head_w)),      # fused padded head
    ]
    out_specs = batch_spec(pack_w)
    out_shape = jax.ShapeDtypeStruct((B, pack_w), jnp.float32)

    kernel = functools.partial(_vae_encoder_kernel, latent=latent)

    packed = pl.pallas_call(
        kernel,
        grid_spec=pltpu.PrefetchScalarGridSpec(
            num_scalar_prefetch=0,
            grid=grid,
            in_specs=in_specs,
            out_specs=out_specs,
        ),
        out_shape=out_shape,
        compiler_params=pltpu.CompilerParams(
            dimension_semantics=("parallel",),   # >=2 tiles -> both v7x TCs busy
        ),
    )(x, eps, w1, b1, w2, b2, w3, b3, w_head, b_head)

    if return_packed:
        return packed
    z = packed[:, 0:latent]
    mu = packed[:, latent:2 * latent]
    log_var = packed[:, 2 * latent:3 * latent]
    return z, mu, log_var


def init_params(key, in_dim, l1, l2, l3, latent):
    """Deterministic synthetic init mimicking nn.Linear's uniform(-k, k),
    k = 1/sqrt(fan_in). Weights stored pre-transposed as (fan_in, fan_out);
    biases as (1, fan_out)."""
    dims = [
        ("w1", "b1", in_dim, l1),
        ("w2", "b2", l1, l2),
        ("w3", "b3", l2, l3),
        ("wmu", "bmu", l3, latent),
        ("wlv", "blv", l3, latent),
    ]
    params = {}
    keys = jax.random.split(key, 2 * len(dims))
    for idx, (wn, bn, fi, fo) in enumerate(dims):
        k = 1.0 / jnp.sqrt(jnp.float32(fi))
        params[wn] = jax.random.uniform(
            keys[2 * idx], (fi, fo), jnp.float32, minval=-k, maxval=k)
        params[bn] = jax.random.uniform(
            keys[2 * idx + 1], (1, fo), jnp.float32, minval=-k, maxval=k)
    return params


def _ref(x, eps, p):
    h = jnp.maximum(x @ p["w1"] + p["b1"], 0.0)
    h = jnp.maximum(h @ p["w2"] + p["b2"], 0.0)
    h = jnp.maximum(h @ p["w3"] + p["b3"], 0.0)
    mu_r = h @ p["wmu"] + p["bmu"]
    lv_r = h @ p["wlv"] + p["blv"]
    z_r = eps * jnp.exp(0.5 * lv_r) + mu_r
    return z_r, mu_r, lv_r


if __name__ == "__main__":
    # Small shapes consistent with the MLP encoder.  B=256 -> two 128-row
    # tiles (even split for v7x, full MXU M dim).
    B, IN_DIM, L1, L2, L3, LATENT = 256, 64, 128, 128, 64, 32

    root = jax.random.PRNGKey(0)
    k_params, k_x, k_eps = jax.random.split(root, 3)

    params = init_params(k_params, IN_DIM, L1, L2, L3, LATENT)
    x = jax.random.normal(k_x, (B, IN_DIM), jnp.float32)
    eps = jax.random.normal(k_eps, (B, LATENT), jnp.float32)  # randn_like(std)

    z_r, mu_r, lv_r = _ref(x, eps, params)

    # Default path: bf16 MXU operands, f32 accumulation/epilogue.
    z, mu, log_var = vae_encoder_forward(x, eps, params)
    jax.block_until_ready((z, mu, log_var))
    assert z.shape == (B, LATENT) and mu.shape == (B, LATENT) and log_var.shape == (B, LATENT)
    assert jnp.allclose(z, z_r, atol=5e-2, rtol=5e-2)
    assert jnp.allclose(mu, mu_r, atol=5e-2, rtol=5e-2)
    assert jnp.allclose(log_var, lv_r, atol=5e-2, rtol=5e-2)

    # Exact f32 path.
    z32, mu32, lv32 = vae_encoder_forward(x, eps, params,
                                          compute_dtype=jnp.float32)
    jax.block_until_ready((z32, mu32, lv32))
    assert jnp.allclose(z32, z_r, atol=5e-4, rtol=5e-4)
    assert jnp.allclose(mu32, mu_r, atol=5e-4, rtol=5e-4)
    assert jnp.allclose(lv32, lv_r, atol=5e-4, rtol=5e-4)

    # Ragged batch (no wrapper pad): B=200 -> two 104-row tiles, last one partial.
    Br = 200
    xr, epsr = x[:Br], eps[:Br]
    zr_r, mur_r, lvr_r = _ref(xr, epsr, params)
    zr, mur, lvr = vae_encoder_forward(xr, epsr, params,
                                       compute_dtype=jnp.float32)
    jax.block_until_ready((zr, mur, lvr))
    assert zr.shape == (Br, LATENT)
    assert jnp.allclose(zr, zr_r, atol=5e-4, rtol=5e-4)
    assert jnp.allclose(mur, mur_r, atol=5e-4, rtol=5e-4)
    assert jnp.allclose(lvr, lvr_r, atol=5e-4, rtol=5e-4)

    print("KERNEL_OK")
</pallas_src>

<mosaic_0001>
module attributes {stable_mosaic.version = 11 : i64} {
  func.func @_vae_encoder_kernel(%arg0: i32, %arg1: memref<128x64xf32, #tpu.memory_space<vmem>>, %arg2: memref<128x32xf32, #tpu.memory_space<vmem>>, %arg3: memref<64x128xbf16, #tpu.memory_space<vmem>>, %arg4: memref<1x128xf32, #tpu.memory_space<vmem>>, %arg5: memref<128x128xbf16, #tpu.memory_space<vmem>>, %arg6: memref<1x128xf32, #tpu.memory_space<vmem>>, %arg7: memref<128x64xbf16, #tpu.memory_space<vmem>>, %arg8: memref<1x64xf32, #tpu.memory_space<vmem>>, %arg9: memref<64x96xbf16, #tpu.memory_space<vmem>>, %arg10: memref<1x96xf32, #tpu.memory_space<vmem>>, %arg11: memref<128x128xf32, #tpu.memory_space<vmem>>) attributes {dimension_semantics = [#tpu.dimension_semantics<parallel>], iteration_bounds = array<i64: 2>, scalar_prefetch = 0 : i64, scratch_operands = 0 : i64, tpu.core_type = #tpu.core_type<tc>, window_params = [{transform_indices = @transform_0, window_bounds = array<i64: 128, 64>}, {transform_indices = @transform_1, window_bounds = array<i64: 128, 32>}, {pipeline_mode = #tpu.pipeline_mode<synchronous>, transform_indices = @transform_2, window_bounds = array<i64: 64, 128>}, {pipeline_mode = #tpu.pipeline_mode<synchronous>, transform_indices = @transform_3, window_bounds = array<i64: 1, 128>}, {pipeline_mode = #tpu.pipeline_mode<synchronous>, transform_indices = @transform_4, window_bounds = array<i64: 128, 128>}, {pipeline_mode = #tpu.pipeline_mode<synchronous>, transform_indices = @transform_5, window_bounds = array<i64: 1, 128>}, {pipeline_mode = #tpu.pipeline_mode<synchronous>, transform_indices = @transform_6, window_bounds = array<i64: 128, 64>}, {pipeline_mode = #tpu.pipeline_mode<synchronous>, transform_indices = @transform_7, window_bounds = array<i64: 1, 64>}, {pipeline_mode = #tpu.pipeline_mode<synchronous>, transform_indices = @transform_8, window_bounds = array<i64: 64, 96>}, {pipeline_mode = #tpu.pipeline_mode<synchronous>, transform_indices = @transform_9, window_bounds = array<i64: 1, 96>}, {transform_indices = @transform_10, window_bounds = array<i64: 128, 128>}]} {
    %c0 = arith.constant 0 : index
    %c0_0 = arith.constant 0 : index
    %0 = vector.load %arg1[%c0, %c0_0] : memref<128x64xf32, #tpu.memory_space<vmem>>, vector<128x64xf32>
    %1 = arith.truncf %0 : vector<128x64xf32> to vector<128x64xbf16>
    %c0_1 = arith.constant 0 : index
    %c0_2 = arith.constant 0 : index
    %2 = vector.load %arg3[%c0_1, %c0_2] : memref<64x128xbf16, #tpu.memory_space<vmem>>, vector<64x128xbf16>
    %cst = arith.constant dense<0.000000e+00> : vector<128x128xf32>
    %3 = tpu.matmul %1, %2, %cst {dimension_numbers = #tpu.dot_dimension_numbers<[1], [0], [0], [1], [0, 0, 1, 1], [], []>} : vector<128x64xbf16>, vector<64x128xbf16>, vector<128x128xf32> -> vector<128x128xf32>
    %c0_3 = arith.constant 0 : index
    %c0_4 = arith.constant 0 : index
    %4 = vector.load %arg4[%c0_3, %c0_4] : memref<1x128xf32, #tpu.memory_space<vmem>>, vector<1x128xf32>
    %5 = vector.broadcast %4 : vector<1x128xf32> to vector<128x128xf32>
    %6 = arith.addf %3, %5 : vector<128x128xf32>
    %cst_5 = arith.constant 0.000000e+00 : f32
    %7 = vector.broadcast %cst_5 : f32 to vector<128x128xf32>
    %8 = arith.maximumf %6, %7 : vector<128x128xf32>
    %9 = arith.truncf %8 : vector<128x128xf32> to vector<128x128xbf16>
    %c0_6 = arith.constant 0 : index
    %c0_7 = arith.constant 0 : index
    %10 = vector.load %arg5[%c0_6, %c0_7] : memref<128x128xbf16, #tpu.memory_space<vmem>>, vector<128x128xbf16>
    %cst_8 = arith.constant dense<0.000000e+00> : vector<128x128xf32>
    %11 = tpu.matmul %9, %10, %cst_8 {dimension_numbers = #tpu.dot_dimension_numbers<[1], [0], [0], [1], [0, 0, 1, 1], [], []>} : vector<128x128xbf16>, vector<128x128xbf16>, vector<128x128xf32> -> vector<128x128xf32>
    %c0_9 = arith.constant 0 : index
    %c0_10 = arith.constant 0 : index
    %12 = vector.load %arg6[%c0_9, %c0_10] : memref<1x128xf32, #tpu.memory_space<vmem>>, vector<1x128xf32>
    %13 = vector.broadcast %12 : vector<1x128xf32> to vector<128x128xf32>
    %14 = arith.addf %11, %13 : vector<128x128xf32>
    %cst_11 = arith.constant 0.000000e+00 : f32
    %15 = vector.broadcast %cst_11 : f32 to vector<128x128xf32>
    %16 = arith.maximumf %14, %15 : vector<128x128xf32>
    %17 = arith.truncf %16 : vector<128x128xf32> to vector<128x128xbf16>
    %c0_12 = arith.constant 0 : index
    %c0_13 = arith.constant 0 : index
    %18 = vector.load %arg7[%c0_12, %c0_13] : memref<128x64xbf16, #tpu.memory_space<vmem>>, vector<128x64xbf16>
    %cst_14 = arith.constant dense<0.000000e+00> : vector<128x64xf32>
    %19 = tpu.matmul %17, %18, %cst_14 {dimension_numbers = #tpu.dot_dimension_numbers<[1], [0], [0], [1], [0, 0, 1, 1], [], []>} : vector<128x128xbf16>, vector<128x64xbf16>, vector<128x64xf32> -> vector<128x64xf32>
    %c0_15 = arith.constant 0 : index
    %c0_16 = arith.constant 0 : index
    %20 = vector.load %arg8[%c0_15, %c0_16] : memref<1x64xf32, #tpu.memory_space<vmem>>, vector<1x64xf32>
    %21 = vector.broadcast %20 : vector<1x64xf32> to vector<128x64xf32>
    %22 = arith.addf %19, %21 : vector<128x64xf32>
    %cst_17 = arith.constant 0.000000e+00 : f32
    %23 = vector.broadcast %cst_17 : f32 to vector<128x64xf32>
    %24 = arith.maximumf %22, %23 : vector<128x64xf32>
    %25 = arith.truncf %24 : vector<128x64xf32> to vector<128x64xbf16>
    %c0_18 = arith.constant 0 : index
    %c0_19 = arith.constant 0 : index
    %26 = vector.load %arg9[%c0_18, %c0_19] : memref<64x96xbf16, #tpu.memory_space<vmem>>, vector<64x96xbf16>
    %cst_20 = arith.constant dense<0.000000e+00> : vector<128x96xf32>
    %27 = tpu.matmul %25, %26, %cst_20 {dimension_numbers = #tpu.dot_dimension_numbers<[1], [0], [0], [1], [0, 0, 1, 1], [], []>} : vector<128x64xbf16>, vector<64x96xbf16>, vector<128x96xf32> -> vector<128x96xf32>
    %c0_21 = arith.constant 0 : index
    %c0_22 = arith.constant 0 : index
    %28 = vector.load %arg10[%c0_21, %c0_22] : memref<1x96xf32, #tpu.memory_space<vmem>>, vector<1x96xf32>
    %29 = vector.broadcast %28 : vector<1x96xf32> to vector<128x96xf32>
    %30 = arith.addf %27, %29 : vector<128x96xf32>
    %31 = vector.extract_strided_slice %30 {offsets = [0, 0], sizes = [128, 32], strides = [1, 1]} : vector<128x96xf32> to vector<128x32xf32>
    %32 = vector.extract_strided_slice %30 {offsets = [0, 32], sizes = [128, 32], strides = [1, 1]} : vector<128x96xf32> to vector<128x32xf32>
    %c0_23 = arith.constant 0 : index
    %c0_24 = arith.constant 0 : index
    %33 = vector.load %arg2[%c0_23, %c0_24] : memref<128x32xf32, #tpu.memory_space<vmem>>, vector<128x32xf32>
    %cst_25 = arith.constant 5.000000e-01 : f32
    %34 = vector.broadcast %cst_25 : f32 to vector<128x32xf32>
    %35 = arith.mulf %34, %32 : vector<128x32xf32>
    %36 = math.exp %35 : vector<128x32xf32>
    %37 = arith.mulf %33, %36 : vector<128x32xf32>
    %38 = arith.addf %37, %31 : vector<128x32xf32>
    %39 = tpu.concatenate %38, %30 in 1 : vector<128x32xf32>, vector<128x96xf32> -> vector<128x128xf32>
    %c0_26 = arith.constant 0 : index
    %c0_27 = arith.constant 0 : index
    %40 = vector.load %arg11[%c0_26, %c0_27] : memref<128x128xf32, #tpu.memory_space<vmem>>, vector<128x128xf32>
    tpu.vector_store %arg11[%c0_26, %c0_27], %39 {strides = array<i32>} : memref<128x128xf32, #tpu.memory_space<vmem>>, vector<128x128xf32>,
    return
  }
  func.func @transform_0(%arg0: i32) -> (i32, i32) {
    %c0_i32 = arith.constant 0 : i32
    %c0_i32_0 = arith.constant 0 : i32
    return %arg0, %c0_i32 : i32, i32
  }
  func.func @transform_1(%arg0: i32) -> (i32, i32) {
    %c0_i32 = arith.constant 0 : i32
    %c0_i32_0 = arith.constant 0 : i32
    return %arg0, %c0_i32 : i32, i32
  }
  func.func @transform_2(%arg0: i32) -> (i32, i32) {
    %c0_i32 = arith.constant 0 : i32
    %c0_i32_0 = arith.constant 0 : i32
    %c0_i32_1 = arith.constant 0 : i32
    return %c0_i32, %c0_i32_0 : i32, i32
  }
  func.func @transform_3(%arg0: i32) -> (i32, i32) {
    %c0_i32 = arith.constant 0 : i32
    %c0_i32_0 = arith.constant 0 : i32
    %c0_i32_1 = arith.constant 0 : i32
    return %c0_i32, %c0_i32_0 : i32, i32
  }
  func.func @transform_4(%arg0: i32) -> (i32, i32) {
    %c0_i32 = arith.constant 0 : i32
    %c0_i32_0 = arith.constant 0 : i32
    %c0_i32_1 = arith.constant 0 : i32
    return %c0_i32, %c0_i32_0 : i32, i32
  }
  func.func @transform_5(%arg0: i32) -> (i32, i32) {
    %c0_i32 = arith.constant 0 : i32
    %c0_i32_0 = arith.constant 0 : i32
    %c0_i32_1 = arith.constant 0 : i32
    return %c0_i32, %c0_i32_0 : i32, i32
  }
  func.func @transform_6(%arg0: i32) -> (i32, i32) {
    %c0_i32 = arith.constant 0 : i32
    %c0_i32_0 = arith.constant 0 : i32
    %c0_i32_1 = arith.constant 0 : i32
    return %c0_i32, %c0_i32_0 : i32, i32
  }
  func.func @transform_7(%arg0: i32) -> (i32, i32) {
    %c0_i32 = arith.constant 0 : i32
    %c0_i32_0 = arith.constant 0 : i32
    %c0_i32_1 = arith.constant 0 : i32
    return %c0_i32, %c0_i32_0 : i32, i32
  }
  func.func @transform_8(%arg0: i32) -> (i32, i32) {
    %c0_i32 = arith.constant 0 : i32
    %c0_i32_0 = arith.constant 0 : i32
    %c0_i32_1 = arith.constant 0 : i32
    return %c0_i32, %c0_i32_0 : i32, i32
  }
  func.func @transform_9(%arg0: i32) -> (i32, i32) {
    %c0_i32 = arith.constant 0 : i32
    %c0_i32_0 = arith.constant 0 : i32
    %c0_i32_1 = arith.constant 0 : i32
    return %c0_i32, %c0_i32_0 : i32, i32
  }
  func.func @transform_10(%arg0: i32) -> (i32, i32) {
    %c0_i32 = arith.constant 0 : i32
    %c0_i32_0 = arith.constant 0 : i32
    return %arg0, %c0_i32 : i32, i32
  }
}

</mosaic_0001>

<bundles_post_ra>
// kernel: vae_encoder_forward.1
= control target key start
LH: loop header
LB: loop body
LE: loop exit
PB: predicated region body
PF: predicated region fallthrough
CT: control target
= control target key end

     0   :  { %s1828_s13 = smov 0   ;;  %s2171_s0 = inlined_call_operand.vmem [shape: f32[256,64], index: 0, kind: input, shape index: {}]   ;;  %s2172_s1 = inlined_call_operand.vmem [shape: f32[256,32], index: 1, kind: input, shape index: {}]   ;;  %s2173_s2 = inlined_call_operand.vmem [shape: bf16[64,128], index: 2, kind: input, shape index: {}]   ;;  %s2174_s3 = inlined_call_operand.vmem [shape: f32[1,128], index: 3, kind: input, shape index: {}]   ;;  %s2175_s4 = inlined_call_operand.vmem [shape: bf16[128,128], index: 4, kind: input, shape index: {}]   ;;  %s2176_s5 = inlined_call_operand.vmem [shape: f32[1,128], index: 5, kind: input, shape index: {}]   ;;  %s2177_s6 = inlined_call_operand.vmem [shape: bf16[128,64], index: 6, kind: input, shape index: {}]   ;;  %s2178_s7 = inlined_call_operand.vmem [shape: f32[1,64], index: 7, kind: input, shape index: {}]   ;;  %s2179_s8 = inlined_call_operand.vmem [shape: bf16[64,96], index: 8, kind: input, shape index: {}]   ;;  %s2180_s9 = inlined_call_operand.vmem [shape: f32[1,96], index: 9, kind: input, shape index: {}]   ;;  %s2181_s10 = inlined_call_operand.vmem [shape: f32[256,128], index: 10, kind: output, shape index: {}]  }
   0x1 LB: > { %s1464_s14 = sadd.s32 4294967295, %s1769_s13   ;;  %p1468_p0 = scmp.ge.s32.totalorder %s1769_s13, 1  ;;  %s1769_s13 = sphi %s1828_s13, %s20_s13  }
   0x2   : > { %p324_p1 = scmp.lt.s32.totalorder %s1769_s13, 3 }
   0x4   : > { %p325_p2 = pnand %p1468_p0, %p324_p1 }
   0x5   : > { %v1707_v0 = vld [vmem:[%s2173_s2] sm:$0xff] (!%p325_p2)   ;;  %s1469_s17 = sshll.u32 (!%p325_p2), %s1464_s14, 4  ;;  %v1708_v1 = vld [vmem:[%s2173_s2 + $0x8] sm:$0xff] (!%p325_p2)   ;;  %v1709_v2 = vld [vmem:[%s2173_s2 + $0x10] sm:$0xff] (!%p325_p2)   ;;  %vm449_vm0 = vcmask (!%p325_p2), 523264   ;;  %s1771_s21 = smov (!%p325_p2), 32  }
   0x6   : > { %328 = sbr.rel (%p325_p2) target bundleno = 1081 (0x439), region = 60  ;;  %p368_p3 = scmp.lt.s32.totalorder (!%p325_p2), %s1469_s17, 31  ;;  %1577 = vmatprep.subr.bf16.mxu0 (!%p325_p2), %v1707_v0  ;;  %v1711_v3 = vld [vmem:[%s2175_s4] sm:$0xff] (!%p325_p2)   ;;  %v1712_v4 = vld [vmem:[%s2175_s4 + $0x8] sm:$0xff] (!%p325_p2)   ;;  %v1710_v7 = vld [vmem:[%s2173_s2 + $0x18] sm:$0xff] (!%p325_p2)   ;;  %vm1363_vm1 = vcmask (!%p325_p2), 261120  }
   0x7   : > { %1578 = vmatpush3.bf16.msra.mxu0 (!%p325_p2), %v1707_v0  ;;  %1601 = vmatprep.subr.bf16.mxu1 (!%p325_p2), %v1711_v3  ;;  %v1713_v9 = vld [vmem:[%s2175_s4 + $0x10] sm:$0xff] (!%p325_p2)   ;;  %v1714_v14 = vld [vmem:[%s2175_s4 + $0x18] sm:$0xff] (!%p325_p2)   ;;  %v1715_v17 = vld [vmem:[%s2175_s4 + $0x20] sm:$0xff] (!%p325_p2)   ;;  %s1772_s22 = smov (!%p325_p2), 96  }
   0x8   : > { %1579 = vmatprep.subr.bf16.mxu0 (!%p325_p2), %v1708_v1  ;;  %1602 = vmatpush3.bf16.msra.mxu1 (!%p325_p2), %v1711_v3  ;;  %v1716_v22 = vld [vmem:[%s2175_s4 + $0x28] sm:$0xff] (!%p325_p2)   ;;  %v1717_v34 = vld [vmem:[%s2175_s4 + $0x30] sm:$0xff] (!%p325_p2)   ;;  %v1718_v35 = vld [vmem:[%s2175_s4 + $0x38] sm:$0xff] (!%p325_p2)  }
   0x9   : > { %1603 = vmatprep.subr.bf16.mxu1 (!%p325_p2), %v1712_v4  ;;  %v1719_v36 = vld [vmem:[%s2177_s6] sm:$0xff] (!%p325_p2)   ;;  %v1720_v37 = vld [vmem:[%s2177_s6 + $0x8] sm:$0xff] (!%p325_p2)   ;;  %v1721_v38 = vld [vmem:[%s2177_s6 + $0x10] sm:$0xff] (!%p325_p2)  }
   0xa   : > { %v1722_v39 = vld [vmem:[%s2177_s6 + $0x18] sm:$0xff] (!%p325_p2)   ;;  %v1723_v40 = vld [vmem:[%s2177_s6 + $0x20] sm:$0xff] (!%p325_p2)   ;;  %v1724_v41 = vld [vmem:[%s2177_s6 + $0x28] sm:$0xff] (!%p325_p2)  }
   0xb   : > { %1580 = vmatpush3.bf16.msra.mxu0 (!%p325_p2), %v1708_v1  ;;  %v1475_v42 = vld [vmem:[%s2174_s3] ss:$0 sm:$0xff] (!%p325_p2) }
   0xc   : > { %1581 = vmatprep.subr.bf16.mxu0 (!%p325_p2), %v1709_v2  ;;  %1604 = vmatpush3.bf16.msra.mxu1 (!%p325_p2), %v1712_v4 }
   0xd   : > { %s2183_s17 = smov (!%p368_p3, %s1469_s17), 31  ;;  %1605 = vmatprep.subr.bf16.mxu1 %v1713_v9 }
   0xe   : > { %s1848_s24 = sshll.u32 %s2183_s17, 3 }
   0xf   : > { %s1857_s29 = scalar_lea.vmem %s2171_s0, %s1848_s24  ;;  %1582 = vmatpush3.bf16.msra.mxu0 %v1709_v2  ;;  %s2096_s26 = scalar_lea.vmem %s2172_s1, %s1848_s24 }
  0x10   : > { %v386_v5 = vld [vmem:[%s1857_s29] sm:$0xff]  ;;  %v387_v6 = vld [vmem:[%s1857_s29 + $0x8] sm:$0xff]  ;;  %v388_v10 = vld [vmem:[%s1857_s29 + $0x10] sm:$0xff]  ;;  %1583 = vmatprep.subr.bf16.mxu0 %v1710_v7  ;;  %1606 = vmatpush3.bf16.msra.mxu1 %v1713_v9 }
  0x11   : > { %v402_v8 = vpack.c.bf16 %v387_v6, %v386_v5  ;;  %v389_v11 = vld [vmem:[%s1857_s29 + $0x18] sm:$0xff]  ;;  %v390_v12 = vld [vmem:[%s1857_s29 + $0x20] sm:$0xff]  ;;  %v391_v13 = vld [vmem:[%s1857_s29 + $0x28] sm:$0xff]  ;;  %1607 = vmatprep.subr.bf16.mxu1 %v1714_v14 }
  0x12   : > { %v403_v15 = vpack.c.bf16 %v389_v11, %v388_v10  ;;  %v404_v16 = vpack.c.bf16 %v391_v13, %v390_v12  ;;  %v392_v18 = vld [vmem:[%s1857_s29 + $0x30] sm:$0xff]  ;;  %v393_v19 = vld [vmem:[%s1857_s29 + $0x38] sm:$0xff]  ;;  %v394_v20 = vld [vmem:[%s1857_s29 + $0x40] sm:$0xff] }
  0x13   : > { %1585 = vmatprep.mubr.msk.bf16.mxu0 %vm449_vm0, %v402_v8  ;;  %1584 = vmatpush3.bf16.msra.mxu0 %v1710_v7  ;;  %v395_v21 = vld [vmem:[%s1857_s29 + $0x48] sm:$0xff]  ;;  %v405_v23 = vpack.c.bf16 %v393_v19, %v392_v18  ;;  %v396_v25 = vld [vmem:[%s1857_s29 + $0x50] sm:$0xff]  ;;  %v397_v26 = vld [vmem:[%s1857_s29 + $0x58] sm:$0xff] }
  0x14   : > { %1608 = vmatpush3.bf16.msra.mxu1 %v1714_v14  ;;  %v406_v24 = vpack.c.bf16 %v395_v21, %v394_v20  ;;  %v398_v27 = vld [vmem:[%s1857_s29 + $0x60] sm:$0xff]  ;;  %v399_v28 = vld [vmem:[%s1857_s29 + $0x68] sm:$0xff]  ;;  %v407_v29 = vpack.c.bf16 %v397_v26, %v396_v25  ;;  %v400_v31 = vld [vmem:[%s1857_s29 + $0x70] sm:$0xff]  ;;  %1633 = vmatprep.subr.bf16.mxu0 %v1719_v36 }
  0x15   : > { %1609 = vmatprep.subr.bf16.mxu1 %v1715_v17  ;;  %v408_v30 = vpack.c.bf16 %v399_v28, %v398_v27  ;;  %v401_v32 = vld [vmem:[%s1857_s29 + $0x78] sm:$0xff]  ;;  %s2104_s29 = scalar_lea.vmem %s2181_s10, %s1848_s24 }
  0x16   : > { %1586 = vmatmul.mubr.msk.bf16.vlgmr.msra.gmra.mrb[0].mxu0 %vm449_vm0, %v403_v15  ;;  %v409_v33 = vpack.c.bf16 %v401_v32, %v400_v31 }
  0x17   : > { %1589 = vmatprep.mubr.msk.bf16.mxu0 %vm449_vm0, %v404_v16  ;;  %1634 = vmatpush3.bf16.msra.mxu0 %v1719_v36  ;;  %v1726_v36 = vld [vmem:[%s2177_s6 + $0x38] sm:$0xff]  }
  0x18   : > { %1610 = vmatpush3.bf16.msra.mxu1 %v1715_v17  ;;  %1635 = vmatprep.subr.bf16.mxu0 %v1720_v37 }
  0x19   : > { %1611 = vmatprep.subr.bf16.mxu1 %v1716_v22 }
  0x1b   : > { %1636 = vmatpush3.bf16.msra.mxu0 %v1720_v37  ;;  %v1727_v37 = vld [vmem:[%s2179_s8] sm:$0xff]  }
  0x1c   : > { %1612 = vmatpush3.bf16.msra.mxu1 %v1716_v22  ;;  %1637 = vmatprep.subr.bf16.mxu0 %v1721_v38 }
  0x1d   : > { %1613 = vmatprep.subr.bf16.mxu1 %v1717_v34 }
  0x1e   : > { %1590 = vmatmul.mubr.msk.bf16.gmra.mrb[4].mxu0 %vm449_vm0, %v405_v23 }
  0x1f   : > { %1593 = vmatprep.mubr.msk.bf16.mxu0 %vm449_vm0, %v406_v24  ;;  %1638 = vmatpush3.bf16.msra.mxu0 %v1721_v38  ;;  %v1728_v38 = vld [vmem:[%s2179_s8 + $0x8] sm:$0xff]  }
  0x20   : > { %1614 = vmatpush3.bf16.msra.mxu1 %v1717_v34  ;;  %1639 = vmatprep.subr.bf16.mxu0 %v1722_v39 }
  0x21   : > { %1615 = vmatprep.subr.bf16.mxu1 %v1718_v35 }
  0x23   : > { %1640 = vmatpush3.bf16.msra.mxu0 %v1722_v39  ;;  %v1729_v39 = vld [vmem:[%s2179_s8 + $0x10] sm:$0xff]  }
  0x24   : > { %1616 = vmatpush3.bf16.msra.mxu1 %v1718_v35  ;;  %1641 = vmatprep.subr.bf16.mxu0 %v1723_v40  ;;  %v1725_v35 = vld [vmem:[%s2177_s6 + $0x30] sm:$0xff]  }
  0x25   : > { %1689 = vmatprep.subr.bf16.mxu1 %v1727_v37 }
  0x26   : > { %1594 = vmatmul.mubr.msk.bf16.gmra.mrb[8].mxu0 %vm449_vm0, %v407_v29 }
  0x27   : > { %1597 = vmatprep.mubr.msk.bf16.mxu0 %vm449_vm0, %v408_v30  ;;  %1642 = vmatpush3.bf16.msra.mxu0 %v1723_v40  ;;  %v1943_v40 = vld [vmem:[%s2176_s5] ss:$0 sm:$0xff] }
  0x28   : > { %1643 = vmatprep.subr.bf16.mxu0 %v1724_v41 }
  0x2b   : > { %1644 = vmatpush3.bf16.msra.mxu0 %v1724_v41 }
  0x2c   : > { %1645 = vmatprep.subr.bf16.mxu0 %v1725_v35 }
  0x2e   : > { %1598 = vmatmul.mubr.msk.bf16.gmra.mrb[12].mxu0 %vm449_vm0, %v409_v33 }
  0x2f   : > { %1646 = vmatpush3.bf16.msra.mxu0 %v1725_v35 }
  0x30   : > { %1647 = vmatprep.subr.bf16.mxu0 %v1726_v36 }
  0x33   : > { %1648 = vmatpush3.bf16.msra.mxu0 %v1726_v36 }
  0x34   : > { %1665 = vmatprep.subr.bf16.mxu0 %v1727_v37 }
  0xe9   : > { %v1587_v43 = vpop.f32.mrb[0].mxu0 }
  0xea   : > { %v517_v44 = vadd.f32 %v1587_v43, %v1475_v42  ;;  %v508_v45 = vpop.f32.mrb[1].mxu0 }
  0xeb   : > { %v509_v46 = vadd.f32 %v1475_v42, %v508_v45  ;;  %v1588_v47 = vpop.f32.mrb[2].mxu0 }
  0xec   : > { %v520_v48 = vadd.f32 %v1588_v47, %v1475_v42  ;;  %v511_v49 = vpop.f32.mrb[3].mxu0  ;;  %v573_v51 = vmax.f32 %v517_v44, 0.0 }
  0xed   : > { %v512_v50 = vadd.f32 %v1475_v42, %v511_v49  ;;  %v571_v53 = vmax.f32 %v509_v46, 0.0 }
  0xee   : > { %v574_v52 = vmax.f32 %v520_v48, 0.0 }
  0xef   : > { %v572_v54 = vmax.f32 %v512_v50, 0.0 }
  0xf0   : > { %v588_v55 = vpack.c.bf16 %v574_v52, %v573_v51 }
  0xf1   : > { %v1591_v56 = vpop.f32.mrb[4].mxu0  ;;  %v587_v57 = vpack.c.bf16 %v572_v54, %v571_v53 }
  0xf2   : > { %v533_v58 = vadd.f32 %v1591_v56, %v1475_v42  ;;  %v524_v59 = vpop.f32.mrb[5].mxu0 }
  0xf3   : > { %v525_v60 = vadd.f32 %v1475_v42, %v524_v59  ;;  %v1592_v61 = vpop.f32.mrb[6].mxu0  ;;  %1617 = vmatprep.mubr.bf16.mxu1 %v587_v57 }
  0xf4   : > { %v536_v62 = vadd.f32 %v1592_v61, %v1475_v42  ;;  %v527_v63 = vpop.f32.mrb[7].mxu0  ;;  %1618 = vmatmul.mubr.bf16.vlgmr.msra.gmra.mrb[0].mxu1 %v588_v55  ;;  %v577_v1 = vmax.f32 %v533_v58, 0.0 }
  0xf5   : > { %v528_v0 = vadd.f32 %v1475_v42, %v527_v63  ;;  %v575_v3 = vmax.f32 %v525_v60, 0.0  ;;  %1693 = vmatpush3.bf16.msra.mxu1 %v1727_v37 }
  0xf6   : > { %v578_v2 = vmax.f32 %v536_v62, 0.0  ;;  %1690 = vmatprep.subr.bf16.mxu1 %v1728_v38 }
  0xf7   : > { %v576_v4 = vmax.f32 %v528_v0, 0.0 }
  0xf8   : > { %v590_v5 = vpack.c.bf16 %v578_v2, %v577_v1 }
  0xf9   : > { %v589_v6 = vpack.c.bf16 %v576_v4, %v575_v3  ;;  %v1595_v7 = vpop.f32.mrb[8].mxu0  ;;  %1694 = vmatpush3.bf16.msra.mxu1 %v1728_v38 }
  0xfa   : > { %v549_v8 = vadd.f32 %v1595_v7, %v1475_v42  ;;  %v540_v9 = vpop.f32.mrb[9].mxu0  ;;  %1691 = vmatprep.subr.bf16.mxu1 %v1729_v39 }
  0xfb   : > { %v541_v10 = vadd.f32 %v1475_v42, %v540_v9  ;;  %v1596_v11 = vpop.f32.mrb[10].mxu0  ;;  %1621 = vmatprep.mubr.bf16.mxu1 %v589_v6 }
  0xfc   : > { %v581_v12 = vmax.f32 %v549_v8, 0.0  ;;  %v552_v13 = vadd.f32 %v1596_v11, %v1475_v42  ;;  %v543_v14 = vpop.f32.mrb[11].mxu0  ;;  %1622 = vmatmul.mubr.bf16.gmra.mrb[4].mxu1 %v590_v5 }
  0xfd   : > { %v579_v15 = vmax.f32 %v541_v10, 0.0  ;;  %v544_v16 = vadd.f32 %v1475_v42, %v543_v14  ;;  %1695 = vmatpush3.bf16.msra.mxu1 %v1729_v39 }
  0xfe   : > { %v582_v17 = vmax.f32 %v552_v13, 0.0 }
  0xff   : > { %v580_v18 = vmax.f32 %v544_v16, 0.0 }
 0x100   : > { %v592_v19 = vpack.c.bf16 %v582_v17, %v581_v12 }
 0x101   : > { %v591_v20 = vpack.c.bf16 %v580_v18, %v579_v15  ;;  %v1599_v21 = vpop.f32.mrb[12].mxu0 }
 0x102   : > { %v565_v22 = vadd.f32 %v1599_v21, %v1475_v42  ;;  %v556_v23 = vpop.f32.mrb[13].mxu0 }
 0x103   : > { %v557_v24 = vadd.f32 %v1475_v42, %v556_v23  ;;  %v1600_v25 = vpop.f32.mrb[14].mxu0  ;;  %1625 = vmatprep.mubr.bf16.mxu1 %v591_v20 }
 0x104   : > { %v585_v26 = vmax.f32 %v565_v22, 0.0  ;;  %v568_v27 = vadd.f32 %v1600_v25, %v1475_v42  ;;  %v559_v28 = vpop.f32.mrb[15].mxu0  ;;  %1626 = vmatmul.mubr.bf16.gmra.mrb[8].mxu1 %v592_v19 }
 0x105   : > { %v583_v29 = vmax.f32 %v557_v24, 0.0  ;;  %v560_v30 = vadd.f32 %v1475_v42, %v559_v28 }
 0x106   : > { %v586_v31 = vmax.f32 %v568_v27, 0.0 }
 0x107   : > { %v584_v32 = vmax.f32 %v560_v30, 0.0 }
 0x108   : > { %v594_v33 = vpack.c.bf16 %v586_v31, %v585_v26 }
 0x109   : > { %v593_v34 = vpack.c.bf16 %v584_v32, %v583_v29 }
 0x10b   : > { %1629 = vmatprep.mubr.bf16.mxu1 %v593_v34  ;;  %v1497_v34 = vld [vmem:[%s2178_s7] ss:$0 sm:$0xff] }
 0x10c   : > { %1630 = vmatmul.mubr.bf16.gmra.mrb[12].mxu1 %v594_v33  ;;  %v1730_v33 = vld [vmem:[%s2179_s8 + $0x18] sm:$0xff]  }
 0x10d   : > { %1692 = vmatprep.subr.bf16.mxu1 %v1730_v33 }
 0x10e   : > { %1696 = vmatpush3.bf16.msra.mxu1 %v1730_v33 }
 0x1c7   : > { %v1619_v41 = vpop.f32.mrb[0].mxu1 }
 0x1c8   : > { %v709_v42 = vadd.f32 %v1619_v41, %v1943_v40  ;;  %v700_v43 = vpop.f32.mrb[1].mxu1 }
 0x1c9   : > { %v701_v44 = vadd.f32 %v1943_v40, %v700_v43  ;;  %v1620_v45 = vpop.f32.mrb[2].mxu1 }
 0x1ca   : > { %v712_v46 = vadd.f32 %v1620_v45, %v1943_v40  ;;  %v703_v47 = vpop.f32.mrb[3].mxu1  ;;  %v765_v49 = vmax.f32 %v709_v42, 0.0 }
 0x1cb   : > { %v704_v48 = vadd.f32 %v1943_v40, %v703_v47  ;;  %v763_v51 = vmax.f32 %v701_v44, 0.0 }
 0x1cc   : > { %v766_v50 = vmax.f32 %v712_v46, 0.0 }
 0x1cd   : > { %v764_v52 = vmax.f32 %v704_v48, 0.0 }
 0x1ce   : > { %v780_v53 = vpack.c.bf16 %v766_v50, %v765_v49 }
 0x1cf   : > { %v779_v54 = vpack.c.bf16 %v764_v52, %v763_v51  ;;  %v1623_v55 = vpop.f32.mrb[4].mxu1 }
 0x1d0   : > { %v725_v56 = vadd.f32 %v1623_v55, %v1943_v40  ;;  %v716_v57 = vpop.f32.mrb[5].mxu1 }
 0x1d1   : > { %v717_v58 = vadd.f32 %v1943_v40, %v716_v57  ;;  %v1624_v59 = vpop.f32.mrb[6].mxu1  ;;  %1649 = vmatprep.mubr.bf16.mxu0 %v779_v54 }
 0x1d2   : > { %v728_v60 = vadd.f32 %v1624_v59, %v1943_v40  ;;  %v719_v61 = vpop.f32.mrb[7].mxu1  ;;  %1650 = vmatmul.mubr.bf16.vlgmr.msra.gmra.mrb[16].mxu0 %v780_v53  ;;  %v769_v63 = vmax.f32 %v725_v56, 0.0 }
 0x1d3   : > { %v720_v62 = vadd.f32 %v1943_v40, %v719_v61  ;;  %1666 = vmatpush3.bf16.msra.mxu0 %v1727_v37  ;;  %v767_v1 = vmax.f32 %v717_v58, 0.0 }
 0x1d4   : > { %v770_v0 = vmax.f32 %v728_v60, 0.0  ;;  %1667 = vmatprep.subr.bf16.mxu0 %v1728_v38 }
 0x1d5   : > { %v768_v2 = vmax.f32 %v720_v62, 0.0 }
 0x1d6   : > { %v782_v3 = vpack.c.bf16 %v770_v0, %v769_v63 }
 0x1d7   : > { %v781_v4 = vpack.c.bf16 %v768_v2, %v767_v1  ;;  %v1627_v5 = vpop.f32.mrb[8].mxu1  ;;  %1668 = vmatpush3.bf16.msra.mxu0 %v1728_v38 }
 0x1d8   : > { %v741_v6 = vadd.f32 %v1627_v5, %v1943_v40  ;;  %v732_v7 = vpop.f32.mrb[9].mxu1  ;;  %1669 = vmatprep.subr.bf16.mxu0 %v1729_v39 }
 0x1d9   : > { %v733_v8 = vadd.f32 %v1943_v40, %v732_v7  ;;  %v1628_v9 = vpop.f32.mrb[10].mxu1  ;;  %1653 = vmatprep.mubr.bf16.mxu0 %v781_v4 }
 0x1da   : > { %v773_v10 = vmax.f32 %v741_v6, 0.0  ;;  %v744_v11 = vadd.f32 %v1628_v9, %v1943_v40  ;;  %v735_v12 = vpop.f32.mrb[11].mxu1  ;;  %1654 = vmatmul.mubr.bf16.gmra.mrb[20].mxu0 %v782_v3 }
 0x1db   : > { %v771_v13 = vmax.f32 %v733_v8, 0.0  ;;  %v736_v14 = vadd.f32 %v1943_v40, %v735_v12  ;;  %1670 = vmatpush3.bf16.msra.mxu0 %v1729_v39 }
 0x1dc   : > { %v774_v15 = vmax.f32 %v744_v11, 0.0  ;;  %1671 = vmatprep.subr.bf16.mxu0 %v1730_v33 }
 0x1dd   : > { %v772_v16 = vmax.f32 %v736_v14, 0.0 }
 0x1de   : > { %v784_v17 = vpack.c.bf16 %v774_v15, %v773_v10 }
 0x1df   : > { %v783_v18 = vpack.c.bf16 %v772_v16, %v771_v13  ;;  %v1631_v19 = vpop.f32.mrb[12].mxu1  ;;  %1672 = vmatpush3.bf16.msra.mxu0 %v1730_v33 }
 0x1e0   : > { %v757_v20 = vadd.f32 %v1631_v19, %v1943_v40  ;;  %v748_v21 = vpop.f32.mrb[13].mxu1 }
 0x1e1   : > { %v749_v22 = vadd.f32 %v1943_v40, %v748_v21  ;;  %v1632_v23 = vpop.f32.mrb[14].mxu1  ;;  %1657 = vmatprep.mubr.bf16.mxu0 %v783_v18 }
 0x1e2   : > { %v777_v24 = vmax.f32 %v757_v20, 0.0  ;;  %v760_v25 = vadd.f32 %v1632_v23, %v1943_v40  ;;  %v751_v26 = vpop.f32.mrb[15].mxu1  ;;  %1658 = vmatmul.mubr.bf16.gmra.mrb[24].mxu0 %v784_v17 }
 0x1e3   : > { %v775_v27 = vmax.f32 %v749_v22, 0.0  ;;  %v752_v28 = vadd.f32 %v1943_v40, %v751_v26 }
 0x1e4   : > { %v778_v29 = vmax.f32 %v760_v25, 0.0 }
 0x1e5   : > { %v776_v30 = vmax.f32 %v752_v28, 0.0 }
 0x1e6   : > { %v786_v31 = vpack.c.bf16 %v778_v29, %v777_v24 }
 0x1e7   : > { %v785_v32 = vpack.c.bf16 %v776_v30, %v775_v27  ;;  %v1978_v27 = vld [vmem:[%s2180_s9] ss:$0 sm:$0xff] }
 0x1e9   : > { %1661 = vmatprep.mubr.bf16.mxu0 %v785_v32 }
 0x1ea   : > { %1662 = vmatmul.mubr.bf16.gmra.mrb[28].mxu0 %v786_v31 }
 0x2a5   : > { %v1651_v35 = vpop.f32.mrb[16].mxu0 }
 0x2a6   : > { %v901_v36 = vadd.f32 %v1651_v35, %v1497_v34  ;;  %v892_v37 = vpop.f32.mrb[17].mxu0 }
 0x2a7   : > { %v893_v38 = vadd.f32 %v1497_v34, %v892_v37  ;;  %v1652_v39 = vpop.f32.mrb[18].mxu0 }
 0x2a8   : > { %v904_v40 = vadd.f32 %v1652_v39, %v1497_v34  ;;  %v895_v41 = vpop.f32.mrb[19].mxu0  ;;  %v957_v43 = vmax.f32 %v901_v36, 0.0 }
 0x2a9   : > { %v896_v42 = vadd.f32 %v1497_v34, %v895_v41  ;;  %v955_v45 = vmax.f32 %v893_v38, 0.0 }
 0x2aa   : > { %v958_v44 = vmax.f32 %v904_v40, 0.0 }
 0x2ab   : > { %v956_v46 = vmax.f32 %v896_v42, 0.0 }
 0x2ac   : > { %v972_v47 = vpack.c.bf16 %v958_v44, %v957_v43 }
 0x2ad   : > { %v971_v48 = vpack.c.bf16 %v956_v46, %v955_v45  ;;  %v1655_v49 = vpop.f32.mrb[20].mxu0 }
 0x2ae   : > { %v917_v50 = vadd.f32 %v1655_v49, %v1497_v34  ;;  %v908_v51 = vpop.f32.mrb[21].mxu0 }
 0x2af   : > { %v909_v52 = vadd.f32 %v1497_v34, %v908_v51  ;;  %v1656_v53 = vpop.f32.mrb[22].mxu0  ;;  %1673 = vmatprep.mubr.msk.bf16.mxu0 %vm449_vm0, %v971_v48 }
 0x2b0   : > { %v920_v54 = vadd.f32 %v1656_v53, %v1497_v34  ;;  %v911_v55 = vpop.f32.mrb[23].mxu0  ;;  %1674 = vmatmul.mubr.msk.bf16.vlgmr.msra.gmra.mrb[32].mxu0 %vm449_vm0, %v972_v47  ;;  %v961_v57 = vmax.f32 %v917_v50, 0.0 }
 0x2b1   : > { %v912_v56 = vadd.f32 %v1497_v34, %v911_v55  ;;  %v959_v59 = vmax.f32 %v909_v52, 0.0 }
 0x2b2   : > { %v962_v58 = vmax.f32 %v920_v54, 0.0 }
 0x2b3   : > { %v960_v60 = vmax.f32 %v912_v56, 0.0 }
 0x2b4   : > { %v974_v61 = vpack.c.bf16 %v962_v58, %v961_v57 }
 0x2b5   : > { %v973_v62 = vpack.c.bf16 %v960_v60, %v959_v59  ;;  %v1659_v63 = vpop.f32.mrb[24].mxu0 }
 0x2b6   : > { %v933_v0 = vadd.f32 %v1659_v63, %v1497_v34  ;;  %v924_v1 = vpop.f32.mrb[25].mxu0 }
 0x2b7   : > { %v925_v2 = vadd.f32 %v1497_v34, %v924_v1  ;;  %v1660_v3 = vpop.f32.mrb[26].mxu0  ;;  %1677 = vmatprep.mubr.msk.bf16.mxu1 %vm449_vm0, %v973_v62 }
 0x2b8   : > { %v936_v4 = vadd.f32 %v1660_v3, %v1497_v34  ;;  %v927_v5 = vpop.f32.mrb[27].mxu0  ;;  %1678 = vmatmul.mubr.msk.bf16.vlgmr.msra.gmra.mrb[16].mxu1 %vm449_vm0, %v974_v61  ;;  %v965_v7 = vmax.f32 %v933_v0, 0.0 }
 0x2b9   : > { %v928_v6 = vadd.f32 %v1497_v34, %v927_v5  ;;  %v963_v9 = vmax.f32 %v925_v2, 0.0 }
 0x2ba   : > { %v966_v8 = vmax.f32 %v936_v4, 0.0 }
 0x2bb   : > { %v964_v10 = vmax.f32 %v928_v6, 0.0 }
 0x2bc   : > { %v976_v11 = vpack.c.bf16 %v966_v8, %v965_v7 }
 0x2bd   : > { %v975_v12 = vpack.c.bf16 %v964_v10, %v963_v9  ;;  %v1663_v13 = vpop.f32.mrb[28].mxu0 }
 0x2be   : > { %v949_v14 = vadd.f32 %v1663_v13, %v1497_v34  ;;  %v940_v15 = vpop.f32.mrb[29].mxu0 }
 0x2bf   : > { %v941_v16 = vadd.f32 %v1497_v34, %v940_v15  ;;  %v1664_v17 = vpop.f32.mrb[30].mxu0  ;;  %1681 = vmatprep.mubr.msk.bf16.mxu1 %vm449_vm0, %v975_v12 }
 0x2c0   : > { %v969_v18 = vmax.f32 %v949_v14, 0.0  ;;  %v952_v19 = vadd.f32 %v1664_v17, %v1497_v34  ;;  %v943_v20 = vpop.f32.mrb[31].mxu0  ;;  %1682 = vmatmul.mubr.msk.bf16.gmra.mrb[20].mxu1 %vm449_vm0, %v976_v11 }
 0x2c1   : > { %v967_v21 = vmax.f32 %v941_v16, 0.0  ;;  %v944_v22 = vadd.f32 %v1497_v34, %v943_v20 }
 0x2c2   : > { %v970_v23 = vmax.f32 %v952_v19, 0.0 }
 0x2c3   : > { %v968_v24 = vmax.f32 %v944_v22, 0.0 }
 0x2c4   : > { %v978_v25 = vpack.c.bf16 %v970_v23, %v969_v18 }
 0x2c5   : > { %v977_v26 = vpack.c.bf16 %v968_v24, %v967_v21 }
 0x2c7   : > { %1685 = vmatprep.mubr.msk.bf16.mxu1 %vm449_vm0, %v977_v26 }
 0x2c8   : > { %1686 = vmatmul.mubr.msk.bf16.gmra.mrb[24].mxu1 %vm449_vm0, %v978_v25 }
 0x383   : > { %v1675_v28 = vpop.f32.mrb[32].mxu0 }
 0x384   : > { %v1981_v29 = vadd.f32 %v1675_v28, %v1978_v27  ;;  %v1076_v30 = vpop.f32.mrb[33].mxu0 }
 0x385   : > { %v1984_v31 = vadd.f32 %v1978_v27, %v1076_v30  ;;  %v1676_v32 = vpop.f32.mrb[34].mxu0 }
 0x386   : > { %v1157_v33 = vmul.f32 0.5, %v1981_v29  ;;  %v1988_v34 = vadd.f32 %v1676_v32, %v1978_v27  ;;  %1319 = vrot.lane.b32.xlu0 %v1981_v29, %s1771_s21  ;;  %v1079_v35 = vpop.f32.mrb[35].mxu0 }
 0x387   : > { %v1155_v36 = vmul.f32 0.5, %v1984_v31  ;;  %v1997_v40 = vadd.f32 %v1978_v27, %v1079_v35 }
 0x388   : > { %1321 = vrot.lane.b32.xlu1 %v1988_v34, %s1771_s21  ;;  %v1175_v37 = vmul.f32 1.442695, %v1157_v33  ;;  %v1158_v39 = vmul.f32 0.5, %v1988_v34 }
 0x389   : > { %v1171_v38 = vmul.f32 1.442695, %v1155_v36  ;;  %v1156_v48 = vmul.f32 0.5, %v1997_v40 }
 0x38a   : > { %1315 = vrot.lane.b32.xlu0 %v1984_v31, %s1771_s21  ;;  %v1177_v44 = vmul.f32 1.442695, %v1158_v39 }
 0x38b   : > { %1731 = vpow2.f32 %v1171_v38  ;;  %v1679_v41 = vpop.f32.mrb[16].mxu1  ;;  %v1173_v51 = vmul.f32 1.442695, %v1156_v48 }
 0x38c   : > { %v2002_v42 = vadd.f32 %v1679_v41, %v1978_v27  ;;  %v1092_v43 = vpop.f32.mrb[17].mxu1  ;;  %1317 = vrot.lane.b32.xlu1 %v1997_v40, %s1771_s21  ;;  %1733 = vpow2.f32 %v1175_v37 }
 0x38d   : > { %v1680_v45 = vpop.f32.mrb[18].mxu1  ;;  %v2013_v49 = vadd.f32 %v1978_v27, %v1092_v43  ;;  %1735 = vpow2.f32 %v1177_v44 }
 0x38e   : > { %v2007_v46 = vadd.f32 %v1680_v45, %v1978_v27  ;;  %v1095_v47 = vpop.f32.mrb[19].mxu1  ;;  %1327 = vrot.lane.b32.xlu0 %v2002_v42, %s1771_s21  ;;  %v1161_v52 = vmul.f32 0.5, %v2002_v42  ;;  %1737 = vpow2.f32 %v1173_v51 }
 0x38f   : > { %v2018_v50 = vadd.f32 %v1978_v27, %v1095_v47  ;;  %v1159_v61 = vmul.f32 0.5, %v2013_v49 }
 0x390   : > { %1329 = vrot.lane.b32.xlu1 %v2007_v46, %s1771_s21  ;;  %v1162_v56 = vmul.f32 0.5, %v2007_v46  ;;  %v1183_v60 = vmul.f32 1.442695, %v1161_v52 }
 0x391   : > { %v1160_v0 = vmul.f32 0.5, %v2018_v50  ;;  %v1179_v2 = vmul.f32 1.442695, %v1159_v61 }
 0x392   : > { %1323 = vrot.lane.b32.xlu0 %v2013_v49, %s1771_s21  ;;  %v1185_v63 = vmul.f32 1.442695, %v1162_v56  ;;  %1739 = vpow2.f32 %v1183_v60  ;;  %v1139_v60 = vld [vmem:[%s2096_s26] sm:$0xff] }
 0x393   : > { %v1683_v53 = vpop.f32.mrb[20].mxu1  ;;  %v1181_v6 = vmul.f32 1.442695, %v1160_v0 }
 0x394   : > { %v1108_v54 = vpop.f32.mrb[21].mxu1  ;;  %1325 = vrot.lane.b32.xlu1 %v2018_v50, %s1771_s21  ;;  %v2029_v62 = vadd.f32 %v1683_v53, %v1978_v27  ;;  %1741 = vpow2.f32 %v1185_v63  ;;  %v1141_v63 = vld [vmem:[%s2096_s26 + $0x10] sm:$0xff] }
 0x395   : > { %v1732_v55 = vpop.eup %1731  ;;  %v1684_v57 = vpop.f32.mrb[22].mxu1  ;;  %v2036_v4 = vadd.f32 %v1978_v27, %v1108_v54  ;;  %1743 = vpow2.f32 %v1179_v2 }
 0x396   : > { %v1111_v58 = vpop.f32.mrb[23].mxu1  ;;  %1219 = vrot.lane.b32.xlu0 %v1732_v55, %s1772_s22  ;;  %v1734_v59 = vpop.eup %1733  ;;  %v2040_v7 = vadd.f32 %v1684_v57, %v1978_v27  ;;  %v1165_v10 = vmul.f32 0.5, %v2029_v62  ;;  %1745 = vpow2.f32 %v1181_v6  ;;  %v1142_v6 = vld [vmem:[%s2096_s26 + $0x18] sm:$0xff] }
 0x397   : > { %v1736_v1 = vpop.eup %1735  ;;  %v2049_v13 = vadd.f32 %v1978_v27, %v1111_v58  ;;  %v1163_v15 = vmul.f32 0.5, %v2036_v4 }
 0x398   : > { %1223 = vrot.lane.b32.xlu1 %v1734_v59, %s1772_s22  ;;  %v1738_v11 = vpop.eup %1737  ;;  %v1166_v12 = vmul.f32 0.5, %v2040_v7  ;;  %v1191_v14 = vmul.f32 1.442695, %v1165_v10 }
 0x399   : > { %v1164_v19 = vmul.f32 0.5, %v2049_v13  ;;  %v1187_v22 = vmul.f32 1.442695, %v1163_v15 }
 0x39a   : > { %1335 = vrot.lane.b32.xlu0 %v2029_v62, %s1771_s21  ;;  %v1193_v18 = vmul.f32 1.442695, %v1166_v12  ;;  %1747 = vpow2.f32 %v1191_v14 }
 0x39b   : > { %v1687_v3 = vpop.f32.mrb[24].mxu1  ;;  %v1189_v26 = vmul.f32 1.442695, %v1164_v19 }
 0x39c   : > { %v1124_v5 = vpop.f32.mrb[25].mxu1  ;;  %1225 = vrot.lane.b32.xlu1 %v1736_v1, %s1772_s22  ;;  %v2054_v16 = vadd.f32 %v1687_v3, %v1978_v27  ;;  %v1740_v17 = vpop.eup %1739  ;;  %1749 = vpow2.f32 %v1193_v18 }
 0x39d   : > { %v1688_v8 = vpop.f32.mrb[26].mxu1  ;;  %v2065_v24 = vadd.f32 %v1978_v27, %v1124_v5  ;;  %1751 = vpow2.f32 %v1187_v22  ;;  %v1145_v22 = vld [vmem:[%s2096_s26 + $0x30] sm:$0xff] }
 0x39e   : > { %v1127_v9 = vpop.f32.mrb[27].mxu1  ;;  %1331 = vrot.lane.b32.xlu0 %v2036_v4, %s1771_s21  ;;  %v2060_v20 = vadd.f32 %v1688_v8, %v1978_v27  ;;  %v1742_v21 = vpop.eup %1741  ;;  %v1169_v23 = vmul.f32 0.5, %v2054_v16  ;;  %1753 = vpow2.f32 %v1189_v26  ;;  %v1146_v26 = vld [vmem:[%s2096_s26 + $0x38] sm:$0xff] }
 0x39f   : > { %v1744_v25 = vpop.eup %1743  ;;  %v2070_v30 = vadd.f32 %v1978_v27, %v1127_v9  ;;  %v1167_v35 = vmul.f32 0.5, %v2065_v24 }
 0x3a0   : > { %1337 = vrot.lane.b32.xlu1 %v2040_v7, %s1771_s21  ;;  %v1170_v28 = vmul.f32 0.5, %v2060_v20  ;;  %v1746_v32 = vpop.eup %1745  ;;  %v1199_v33 = vmul.f32 1.442695, %v1169_v23 }
 0x3a1   : > { %v1168_v37 = vmul.f32 0.5, %v2070_v30  ;;  %v1195_v38 = vmul.f32 1.442695, %v1167_v35 }
 0x3a2   : > { %1221 = vrot.lane.b32.xlu0 %v1738_v11, %s1772_s22  ;;  %v1201_v36 = vmul.f32 1.442695, %v1170_v28  ;;  %1755 = vpow2.f32 %v1199_v33  ;;  %v1143_v33 = vld [vmem:[%s2096_s26 + $0x20] sm:$0xff] }
 0x3a3   : > { %v1197_v39 = vmul.f32 1.442695, %v1168_v37 }
 0x3a4   : > { %1333 = vrot.lane.b32.xlu1 %v2049_v13, %s1771_s21  ;;  %v1748_v27 = vpop.eup %1747  ;;  %1757 = vpow2.f32 %v1201_v36 }
 0x3a5   : > { %1759 = vpow2.f32 %v1195_v38  ;;  %v1144_v38 = vld [vmem:[%s2096_s26 + $0x28] sm:$0xff] }
 0x3a6   : > { %1231 = vrot.lane.b32.xlu0 %v1740_v17, %s1772_s22  ;;  %v1750_v41 = vpop.eup %1749  ;;  %1761 = vpow2.f32 %v1197_v39  ;;  %v1140_v17 = vld [vmem:[%s2096_s26 + $0x8] sm:$0xff] }
 0x3a7   : > { %v1752_v43 = vpop.eup %1751 }
 0x3a8   : > { %1233 = vrot.lane.b32.xlu1 %v1742_v21, %s1772_s22  ;;  %v1754_v44 = vpop.eup %1753 }
 0x3aa   : > { %1227 = vrot.lane.b32.xlu0 %v1744_v25, %s1772_s22 }
 0x3ac   : > { %1229 = vrot.lane.b32.xlu1 %v1746_v32, %s1772_s22  ;;  %v1756_v45 = vpop.eup %1755 }
 0x3ae   : > { %1339 = vrot.lane.b32.xlu0 %v2065_v24, %s1771_s21  ;;  %v1758_v47 = vpop.eup %1757 }
 0x3af   : > { %v1760_v48 = vpop.eup %1759 }
 0x3b0   : > { %1341 = vrot.lane.b32.xlu1 %v2070_v30, %s1771_s21  ;;  %v1762_v51 = vpop.eup %1761 }
 0x3b2   : > { %1239 = vrot.lane.b32.xlu0 %v1748_v27, %s1772_s22 }
 0x3b4   : > { %1241 = vrot.lane.b32.xlu1 %v1750_v41, %s1772_s22 }
 0x3b6   : > { %1235 = vrot.lane.b32.xlu0 %v1752_v43, %s1772_s22 }
 0x3b8   : > { %1237 = vrot.lane.b32.xlu1 %v1754_v44, %s1772_s22 }
 0x3ba   : > { %1247 = vrot.lane.b32.xlu0 %v1756_v45, %s1772_s22 }
 0x3bc   : > { %1249 = vrot.lane.b32.xlu1 %v1758_v47, %s1772_s22 }
 0x3be   : > { %1243 = vrot.lane.b32.xlu0 %v1760_v48, %s1772_s22 }
 0x3c0   : > { %1245 = vrot.lane.b32.xlu1 %v1762_v51, %s1772_s22 }
 0x3c2   : > { %1343 = vrot.lane.b32.xlu0 %v2054_v16, %s1771_s21 }
 0x3c4   : > { %1345 = vrot.lane.b32.xlu1 %v2060_v20, %s1771_s21 }
 0x3f8   : > { %v1320_v52 = vpop.permute.xlu0 %1319 }
 0x3fa   : > { %v1322_v53 = vpop.permute.xlu1 %1321 }
 0x3fc   : > { %v1316_v54 = vpop.permute.xlu0 %1315 }
 0x3fe   : > { %v1318_v55 = vpop.permute.xlu1 %1317 }
 0x400   : > { %v1328_v56 = vpop.permute.xlu0 %1327 }
 0x402   : > { %v1330_v57 = vpop.permute.xlu1 %1329 }
 0x404   : > { %v1324_v58 = vpop.permute.xlu0 %1323 }
 0x406   : > { %v1326_v59 = vpop.permute.xlu1 %1325 }
 0x408   : > { %v1220_v61 = vpop.permute.xlu0 %1219 }
 0x409   : > { %v1267_v0 = vmul.f32 %v1220_v61, %v1139_v60 }
 0x40a   : > { %v1224_v1 = vpop.permute.xlu1 %1223 }
 0x40b   : > { %v1283_v2 = vadd.f32 %v1267_v0, %v1984_v31  ;;  %v1269_v3 = vmul.f32 %v1224_v1, %v1141_v63 }
 0x40c   : > { %v1336_v5 = vpop.permute.xlu0 %1335 }
 0x40d   : > { %v1364_v8 = vsel %vm1363_vm1, %v1283_v2, %v1316_v54  ;;  %v1285_v9 = vadd.f32 %v1269_v3, %v1981_v29  ;;  %v1150_v54 = vld [vmem:[%s2096_s26 + $0x58] sm:$0xff]  ;;  %v1153_v3 = vld [vmem:[%s2096_s26 + $0x70] sm:$0xff] }
 0x40e   : > { %1380 = vst [vmem:[%s2104_s29] sm:$0xff] %v1364_v8  ;;  %v1226_v10 = vpop.permute.xlu1 %1225 }
 0x40f   : > { %v1366_v11 = vsel %vm1363_vm1, %v1285_v9, %v1320_v52  ;;  %v1270_v12 = vmul.f32 %v1226_v10, %v1142_v6  ;;  %v1154_v9 = vld [vmem:[%s2096_s26 + $0x78] sm:$0xff]  ;;  %v1151_v10 = vld [vmem:[%s2096_s26 + $0x60] sm:$0xff] }
 0x410   : > { %1382 = vst [vmem:[%s2104_s29 + $0x10] sm:$0xff] %v1366_v11  ;;  %v1332_v14 = vpop.permute.xlu0 %1331 }
 0x411   : > { %v1286_v31 = vadd.f32 %v1270_v12, %v1988_v34 }
 0x412   : > { %v1338_v15 = vpop.permute.xlu1 %1337 }
 0x413   : > { %v1367_v18 = vsel %vm1363_vm1, %v1286_v31, %v1322_v53 }
 0x414   : > { %1383 = vst [vmem:[%s2104_s29 + $0x18] sm:$0xff] %v1367_v18  ;;  %v1222_v19 = vpop.permute.xlu0 %1221 }
 0x415   : > { %v1268_v29 = vmul.f32 %v1222_v19, %v1140_v17 }
 0x416   : > { %v1334_v21 = vpop.permute.xlu1 %1333 }
 0x417   : > { %v1284_v23 = vadd.f32 %v1268_v29, %v1997_v40 }
 0x418   : > { %v1232_v25 = vpop.permute.xlu0 %1231 }
 0x419   : > { %v1365_v28 = vsel %vm1363_vm1, %v1284_v23, %v1318_v55  ;;  %v1273_v32 = vmul.f32 %v1232_v25, %v1145_v22 }
 0x41a   : > { %1381 = vst [vmem:[%s2104_s29 + $0x8] sm:$0xff] %v1365_v28  ;;  %v1234_v34 = vpop.permute.xlu1 %1233 }
 0x41b   : > { %v1289_v35 = vadd.f32 %v1273_v32, %v2002_v42  ;;  %v1274_v36 = vmul.f32 %v1234_v34, %v1146_v26 }
 0x41c   : > { %v1228_v37 = vpop.permute.xlu0 %1227 }
 0x41d   : > { %v1370_v27 = vsel %vm1363_vm1, %v1289_v35, %v1328_v56  ;;  %v1290_v40 = vadd.f32 %v1274_v36, %v2007_v46  ;;  %v1271_v39 = vmul.f32 %v1228_v37, %v1143_v33  ;;  %v1149_v46 = vld [vmem:[%s2096_s26 + $0x50] sm:$0xff]  ;;  %v1147_v56 = vld [vmem:[%s2096_s26 + $0x40] sm:$0xff] }
 0x41e   : > { %1386 = vst [vmem:[%s2104_s29 + $0x30] sm:$0xff] %v1370_v27  ;;  %v1230_v41 = vpop.permute.xlu1 %1229 }
 0x41f   : > { %v1371_v43 = vsel %vm1363_vm1, %v1290_v40, %v1330_v57  ;;  %v1287_v44 = vadd.f32 %v1271_v39, %v2013_v49  ;;  %v1272_v42 = vmul.f32 %v1230_v41, %v1144_v38 }
 0x420   : > { %1387 = vst [vmem:[%s2104_s29 + $0x38] sm:$0xff] %v1371_v43  ;;  %v1340_v45 = vpop.permute.xlu0 %1339 }
 0x421   : > { %v1368_v47 = vsel %vm1363_vm1, %v1287_v44, %v1324_v58  ;;  %v1288_v48 = vadd.f32 %v1272_v42, %v2018_v50  ;;  %v1148_v50 = vld [vmem:[%s2096_s26 + $0x48] sm:$0xff] }
 0x422   : > { %1384 = vst [vmem:[%s2104_s29 + $0x20] sm:$0xff] %v1368_v47  ;;  %v1342_v51 = vpop.permute.xlu1 %1341 }
 0x423   : > { %v1369_v52 = vsel %vm1363_vm1, %v1288_v48, %v1326_v59 }
 0x424   : > { %1385 = vst [vmem:[%s2104_s29 + $0x28] sm:$0xff] %v1369_v52  ;;  %v1240_v53 = vpop.permute.xlu0 %1239 }
 0x425   : > { %v1277_v55 = vmul.f32 %v1240_v53, %v1149_v46 }
 0x426   : > { %v1242_v49 = vpop.permute.xlu1 %1241 }
 0x427   : > { %v1293_v57 = vadd.f32 %v1277_v55, %v2029_v62  ;;  %v1278_v60 = vmul.f32 %v1242_v49, %v1150_v54 }
 0x428   : > { %v1236_v58 = vpop.permute.xlu0 %1235 }
 0x429   : > { %v1374_v61 = vsel %vm1363_vm1, %v1293_v57, %v1336_v5  ;;  %v1294_v59 = vadd.f32 %v1278_v60, %v2040_v7  ;;  %v1275_v63 = vmul.f32 %v1236_v58, %v1147_v56 }
 0x42a   : > { %1390 = vst [vmem:[%s2104_s29 + $0x50] sm:$0xff] %v1374_v61  ;;  %v1238_v0 = vpop.permute.xlu1 %1237 }
 0x42b   : > { %v1375_v1 = vsel %vm1363_vm1, %v1294_v59, %v1338_v15  ;;  %v1291_v2 = vadd.f32 %v1275_v63, %v2036_v4  ;;  %v1276_v62 = vmul.f32 %v1238_v0, %v1148_v50  ;;  %v1152_v4 = vld [vmem:[%s2096_s26 + $0x68] sm:$0xff] }
 0x42c   : > { %1391 = vst [vmem:[%s2104_s29 + $0x58] sm:$0xff] %v1375_v1  ;;  %v1248_v6 = vpop.permute.xlu0 %1247 }
 0x42d   : > { %v1372_v8 = vsel %vm1363_vm1, %v1291_v2, %v1332_v14  ;;  %v1292_v5 = vadd.f32 %v1276_v62, %v2049_v13  ;;  %v1281_v12 = vmul.f32 %v1248_v6, %v1153_v3 }
 0x42e   : > { %1388 = vst [vmem:[%s2104_s29 + $0x40] sm:$0xff] %v1372_v8  ;;  %v1250_v7 = vpop.permute.xlu1 %1249 }
 0x42f   : > { %v1373_v11 = vsel %vm1363_vm1, %v1292_v5, %v1334_v21  ;;  %v1282_v15 = vmul.f32 %v1250_v7, %v1154_v9  ;;  %v1297_v14 = vadd.f32 %v1281_v12, %v2054_v16 }
 0x430   : > { %1389 = vst [vmem:[%s2104_s29 + $0x48] sm:$0xff] %v1373_v11  ;;  %v1244_v31 = vpop.permute.xlu0 %1243 }
 0x431   : > { %v1279_v17 = vmul.f32 %v1244_v31, %v1151_v10  ;;  %v1298_v22 = vadd.f32 %v1282_v15, %v2060_v20 }
 0x432   : > { %v1246_v18 = vpop.permute.xlu1 %1245 }
 0x433   : > { %v1295_v13 = vadd.f32 %v1279_v17, %v2065_v24  ;;  %v1280_v19 = vmul.f32 %v1246_v18, %v1152_v4 }
 0x434   : > { %v1344_v29 = vpop.permute.xlu0 %1343 }
 0x435   : > { %v1376_v21 = vsel %vm1363_vm1, %v1295_v13, %v1340_v45  ;;  %v1296_v23 = vadd.f32 %v1280_v19, %v2070_v30  ;;  %v1378_v25 = vsel %vm1363_vm1, %v1297_v14, %v1344_v29 }
 0x436   : > { %1392 = vst [vmem:[%s2104_s29 + $0x60] sm:$0xff] %v1376_v21  ;;  %1394 = vst [vmem:[%s2104_s29 + $0x70] sm:$0xff] %v1378_v25  ;;  %v1346_v26 = vpop.permute.xlu1 %1345 }
 0x437   : > { %v1377_v28 = vsel %vm1363_vm1, %v1296_v23, %v1342_v51  ;;  %v1379_v32 = vsel %vm1363_vm1, %v1298_v22, %v1346_v26 }
 0x438   : > { %1393 = vst [vmem:[%s2104_s29 + $0x68] sm:$0xff] %v1377_v28  ;;  %1395 = vst [vmem:[%s2104_s29 + $0x78] sm:$0xff] %v1379_v32 }
 0x439 PF: > { %s20_s13 = sadd.s32 1, %s1769_s13  }
 0x43a   : > { %p17_p4 = scmp.ge.s32.totalorder %s20_s13, 4  }
 0x43c   :  { %19 = sbr.rel (!%p17_p4) target bundleno = 1 (0x1), region = 93 }

</bundles_post_ra>
